<compile_context>
chip_gen: v5e
topology: v5e:2x2
jax: 0.10.0
libtpu: 0.0.40
codegen_flags: <defaults>
</compile_context>

<pallas_src>
import functools
import math

import jax
import jax.numpy as jnp
from jax.experimental import pallas as pl
from jax.experimental.pallas import tpu as pltpu


def _pos_emb_kernel(table_ref, t_ref, o_ref, *, scale: float):
    """One B-tile of the sinusoidal embedding.

    table_ref: [2, D] f32, VMEM-resident across all grid steps.
               row 0 = [freq_0..freq_{H-1}, freq_0..freq_{H-1}]
               row 1 = [0,...,0, pi/2,...,pi/2]   (cos(x) == sin(x + pi/2))
    t_ref:     [TILE_B, 1] f32 timesteps for this tile.
    o_ref:     [TILE_B, D] output tile.
    """
    t = t_ref[...].astype(jnp.float32) * jnp.float32(scale)   # [TILE_B, 1]
    freqs = table_ref[0:1, :]                                  # [1, D]
    phase = table_ref[1:2, :]                                  # [1, D]
    # Single full-width store; no concatenate / cross-lane packing, sin and cos
    # halves are never both live as separate vregs.
    o_ref[...] = jnp.sin(t * freqs + phase).astype(o_ref.dtype)


def positional_embedding(
    timesteps: jax.Array,
    embedding_dim: int,
    scale: float,
    *,
    tile_b: int = 1024,
    out_dtype=jnp.float32,   # pass jnp.bfloat16 if the consumer takes bf16 (halves HBM writes)
) -> jax.Array:
    assert timesteps.ndim == 1, "timesteps must be 1-D"
    assert embedding_dim % 2 == 0, "embedding_dim must be even"
    # half_dim == 1 would divide by zero in log(10000)/(half_dim-1) (same as the
    # PyTorch module); require a sane size.
    assert embedding_dim >= 4, "embedding_dim must be >= 4"

    B = timesteps.shape[0]
    half_dim = embedding_dim // 2

    # --- frequency / phase table, built once outside the kernel body -----------
    log_coef = math.log(10000.0) / (half_dim - 1)
    freqs = jnp.exp(jnp.arange(half_dim, dtype=jnp.float32) * jnp.float32(-log_coef))
    freqs_full = jnp.concatenate([freqs, freqs])                          # [D]
    phase = jnp.concatenate(
        [jnp.zeros((half_dim,), jnp.float32),
         jnp.full((half_dim,), math.pi / 2.0, dtype=jnp.float32)])        # [D]
    table = jnp.stack([freqs_full, phase])                                # [2, D]

    # --- tile sizing ------------------------------------------------------------
    # Keep two double-buffered output tiles <= ~16 MiB so the same tile works on
    # v5e (16 MiB scoped default) and v7x (64 MiB physical VMEM).
    max_rows = max(8, (16 * 1024 * 1024) // (embedding_dim * 4 * 2))
    tb = max(8, min(tile_b, max_rows, pl.cdiv(B, 8) * 8))
    tb = (tb // 8) * 8                         # multiple of 8 sublanes
    B_pad = pl.cdiv(B, tb) * tb

    t2d = timesteps.astype(jnp.float32).reshape(B, 1)   # glue reshape outside kernel
    if B_pad != B:
        t2d = jnp.pad(t2d, ((0, B_pad - B), (0, 0)))

    kernel = functools.partial(_pos_emb_kernel, scale=float(scale))
    out = pl.pallas_call(
        kernel,
        out_shape=jax.ShapeDtypeStruct((B_pad, embedding_dim), out_dtype),
        grid=(B_pad // tb,),
        in_specs=[
            # Small table stays resident (same block every grid step).
            pl.BlockSpec((2, embedding_dim), lambda i: (0, 0)),
            pl.BlockSpec((tb, 1), lambda i: (i, 0)),
        ],
        out_specs=pl.BlockSpec((tb, embedding_dim), lambda i: (i, 0)),
        compiler_params=pltpu.CompilerParams(
            dimension_semantics=("parallel",)),    # megacore / v7x 2-TC sharding
    )(table, t2d)

    return out[:B] if B_pad != B else out
    # TODO(synk): at tiny B*D (e.g. 8x32) the pure-JAX path fused into the consumer
    # is cheaper than any standalone pallas_call; this kernel targets large batches.


def _reference(timesteps, embedding_dim, scale):
    # Pure-JAX reference mirroring the PyTorch forward exactly.
    t = timesteps.astype(jnp.float32) * scale
    half_dim = embedding_dim // 2
    emb = math.log(10000.0) / (half_dim - 1)
    emb = jnp.exp(jnp.arange(half_dim, dtype=jnp.float32) * -emb)
    emb = t[:, None] * emb[None, :]
    return jnp.concatenate([jnp.sin(emb), jnp.cos(emb)], axis=1)


if __name__ == "__main__":
    B = 8
    EMBEDDING_DIM = 32
    SCALE = 1000.0

    key = jax.random.PRNGKey(0)
    timesteps = jax.random.uniform(key, (B,), dtype=jnp.float32)  # diffusion timesteps

    out = jax.block_until_ready(positional_embedding(timesteps, EMBEDDING_DIM, SCALE))
    ref = _reference(timesteps, EMBEDDING_DIM, SCALE)

    assert out.shape == (B, EMBEDDING_DIM)
    assert out.dtype == jnp.float32
    # cos(x) is computed as sin(x + pi/2); with |x| up to `scale`~1e3 the f32
    # rounding of the phase add bounds the deviation at a few ulp(scale) ~1e-4.
    assert jnp.allclose(out, ref, atol=1e-3, rtol=1e-3), "mismatch vs reference"

    # Also exercise the padding path (B not a multiple of 8).
    B2 = 13
    ts2 = jax.random.uniform(jax.random.PRNGKey(1), (B2,), dtype=jnp.float32)
    out2 = jax.block_until_ready(positional_embedding(ts2, EMBEDDING_DIM, SCALE))
    ref2 = _reference(ts2, EMBEDDING_DIM, SCALE)
    assert out2.shape == (B2, EMBEDDING_DIM)
    assert jnp.allclose(out2, ref2, atol=1e-3, rtol=1e-3), "mismatch vs reference (padded B)"

    print("KERNEL_OK")
</pallas_src>

<mosaic_0001>
module attributes {stable_mosaic.version = 11 : i64} {
  func.func @_pos_emb_kernel(%arg0: i32, %arg1: memref<2x32xf32, #tpu.memory_space<vmem>>, %arg2: memref<8x1xf32, #tpu.memory_space<vmem>>, %arg3: memref<8x32xf32, #tpu.memory_space<vmem>>) attributes {dimension_semantics = [#tpu.dimension_semantics<parallel>], iteration_bounds = array<i64: 1>, scalar_prefetch = 0 : i64, scratch_operands = 0 : i64, tpu.core_type = #tpu.core_type<tc>, window_params = [{pipeline_mode = #tpu.pipeline_mode<synchronous>, transform_indices = @transform_0, window_bounds = array<i64: 2, 32>}, {transform_indices = @transform_1, window_bounds = array<i64: 8, 1>}, {transform_indices = @transform_2, window_bounds = array<i64: 8, 32>}]} {
    %c0 = arith.constant 0 : index
    %c0_0 = arith.constant 0 : index
    %0 = vector.load %arg2[%c0, %c0_0] : memref<8x1xf32, #tpu.memory_space<vmem>>, vector<8x1xf32>
    %cst = arith.constant 1.000000e+03 : f32
    %1 = vector.broadcast %cst : f32 to vector<8x1xf32>
    %2 = arith.mulf %0, %1 : vector<8x1xf32>
    %c0_1 = arith.constant 0 : index
    %c0_2 = arith.constant 0 : index
    %3 = vector.load %arg1[%c0_1, %c0_2] : memref<2x32xf32, #tpu.memory_space<vmem>>, vector<1x32xf32>
    %c1 = arith.constant 1 : index
    %c0_3 = arith.constant 0 : index
    %4 = vector.load %arg1[%c1, %c0_3] : memref<2x32xf32, #tpu.memory_space<vmem>>, vector<1x32xf32>
    %5 = vector.broadcast %2 : vector<8x1xf32> to vector<8x32xf32>
    %6 = vector.broadcast %3 : vector<1x32xf32> to vector<8x32xf32>
    %7 = arith.mulf %5, %6 : vector<8x32xf32>
    %8 = vector.broadcast %4 : vector<1x32xf32> to vector<8x32xf32>
    %9 = arith.addf %7, %8 : vector<8x32xf32>
    %10 = math.sin %9 : vector<8x32xf32>
    %c0_4 = arith.constant 0 : index
    %c0_5 = arith.constant 0 : index
    %11 = vector.load %arg3[%c0_4, %c0_5] : memref<8x32xf32, #tpu.memory_space<vmem>>, vector<8x32xf32>
    tpu.vector_store %arg3[%c0_4, %c0_5], %10 {strides = array<i32>} : memref<8x32xf32, #tpu.memory_space<vmem>>, vector<8x32xf32>,
    return
  }
  func.func @transform_0(%arg0: i32) -> (i32, i32) {
    %c0_i32 = arith.constant 0 : i32
    %c0_i32_0 = arith.constant 0 : i32
    %c0_i32_1 = arith.constant 0 : i32
    return %c0_i32, %c0_i32_0 : i32, i32
  }
  func.func @transform_1(%arg0: i32) -> (i32, i32) {
    %c0_i32 = arith.constant 0 : i32
    %c0_i32_0 = arith.constant 0 : i32
    return %arg0, %c0_i32 : i32, i32
  }
  func.func @transform_2(%arg0: i32) -> (i32, i32) {
    %c0_i32 = arith.constant 0 : i32
    %c0_i32_0 = arith.constant 0 : i32
    return %arg0, %c0_i32 : i32, i32
  }
}

</mosaic_0001>

<bundles_post_ra>
// kernel: tpu_custom_call.1
= control target key start
LH: loop header
LB: loop body
LE: loop exit
PB: predicated region body
PF: predicated region fallthrough
CT: control target
= control target key end

     0   :  { %v238_v1 = vmov 0   ;;  %s334_s0 = inlined_call_operand.vmem [shape: f32[2,32], index: 0, kind: input, shape index: {}]   ;;  %s335_s1 = inlined_call_operand.vmem [shape: f32[8,1], index: 1, kind: input, shape index: {}]   ;;  %s336_s2 = inlined_call_operand.hbm [shape: f32[8,32], index: 2, kind: output, shape index: {}]  }
   0x1   :  { %v12_v0 = vld [vmem:[%s335_s1] sm:$0xff]  ;;  %209 = vset.pattern.permute.xlu0 %v238_v1 }
   0x2   :  { %v13_v2 = vmul.f32 1000.0, %v12_v0 }
   0x4   :  { %18 = vperm.xlu0 %209, %v13_v2  }
   0x5   :  { %7 = vsyncpa [#allocation3], 0  ;;  %v210_v3 = vld [vmem:[%s334_s0] ss:$0 sm:$0xff]  ;;  %v211_v4 = vld [vmem:[%s334_s0 + $0x1] ss:$0 sm:$0xff] }
   0x6   :  { %v239_v19 = vmov 683565275   ;;  %v240_v21 = vmov 2475754826   ;;  %v241_v24 = vmov 2131351028  }
   0x7   :  { %v242_v27 = vmov 2102212464   ;;  %v243_v30 = vmov 920167782   ;;  %v244_v33 = vmov 1326507024  }
   0x8   :  { %s245_s0 = smov [#allocation2]   ;;  %s189_s17 = sshll.u32 %s336_s2, 4  ;;  %s190_s17 = int_to_ptr.hbm [resolvable:$true] %s189_s17 }
   0x9   :  { %s187_s1 = sshll.u32 %s245_s0, 4  ;;  %s188_s1 = int_to_ptr.vmem [resolvable:$true] %s187_s1 }
  0x76   :  { %v19_v5 = vpop.permute.xlu0 %18 }
  0x77   :  { %v22_v6 = vmul.f32 %v210_v3, %v19_v5 }
  0x79   :  { %v271_v7 = vadd.f32 %v211_v4, %v22_v6 }
  0x7b   :  { %v28_v8 = vand.u32 2139095040, %v271_v7  ;;  %v25_v11 = vand.u32 2147483647, %v271_v7  ;;  %vm27_vm12 = vcmp.lt.s32.totalorder %v271_v7, 0 }
  0x7d   :  { %v29_v9 = vshrl.u32 %v28_v8, 23  ;;  %v32_v13 = vand.u32 8388607, %v25_v11  ;;  %vm26_vm13 = vcmp.le.f32.partialorder %v25_v11, 0.7853982 }
  0x7f   :  { %v198_v10 = vadd.s32 4294967169, %v29_v9  ;;  %v33_v17 = vor.u32 8388608, %v32_v13 }
  0x81   :  { %v35_v12 = vadd.s32 1, %v198_v10  ;;  %v288_v40 = vshll.u32 %v33_v17, 8 }
  0x83   :  { %vm36_vm0 = vcmp.gt.s32.totalorder %v35_v12, 0  ;;  %v74_v49 = vand.u32 65535, %v288_v40  ;;  %v75_v54 = vshrl.u32 %v288_v40, 16 }
  0x84   :  { %v37_v14 = vsel %vm36_vm0, %v35_v12, 0 }
  0x85   :  { %v39_v15 = vand.u32 31, %v37_v14  ;;  %v279_v18 = vshrl.u32 %v37_v14, 5 }
  0x87   :  { %v277_v16 = vsub.s32 32, %v39_v15  ;;  %v42_v20 = vshll.u32 %v239_v19, %v39_v15  ;;  %v45_v22 = vshll.u32 %v240_v21, %v39_v15  ;;  %v48_v26 = vshll.u32 %v241_v24, %v39_v15 }
  0x88   :  { %v51_v29 = vshll.u32 %v242_v27, %v39_v15  ;;  %v54_v32 = vshll.u32 %v243_v30, %v39_v15  ;;  %vm57_vm1 = vcmp.lt.s32.totalorder %v279_v18, 1  ;;  %vm60_vm2 = vcmp.lt.s32.totalorder %v279_v18, 4 }
  0x89   :  { %v43_v23 = vshrl.u32 %v240_v21, %v277_v16  ;;  %v46_v25 = vshrl.u32 %v241_v24, %v277_v16  ;;  %v49_v28 = vshrl.u32 %v242_v27, %v277_v16  ;;  %v52_v31 = vshrl.u32 %v243_v30, %v277_v16 }
  0x8a   :  { %v55_v34 = vshrl.u32 %v244_v33, %v277_v16  ;;  %vm59_vm3 = vcmp.lt.s32.totalorder %v279_v18, 3  ;;  %vm58_vm4 = vcmp.lt.s32.totalorder %v279_v18, 2  ;;  %v41_v13 = vshrl.u32 %v239_v19, %v277_v16 }
  0x8b   :  { %v44_v35 = vor.u32 %v43_v23, %v42_v20  ;;  %v47_v36 = vor.u32 %v46_v25, %v45_v22  ;;  %v50_v37 = vor.u32 %v49_v28, %v48_v26  ;;  %v53_v38 = vor.u32 %v52_v31, %v51_v29 }
  0x8c   :  { %v56_v39 = vor.u32 %v55_v34, %v54_v32 }
  0x8d   :  { %v65_v41 = vsel %vm57_vm1, %v44_v35, %v47_v36  ;;  %v69_v42 = vsel %vm57_vm1, %v47_v36, %v50_v37  ;;  %v66_v43 = vsel %vm60_vm2, %v53_v38, 920167782  ;;  %v62_v6 = vsel %vm60_vm2, %v50_v37, 2102212464 }
  0x8e   :  { %v70_v44 = vsel %vm60_vm2, %v56_v39, 1326507024  ;;  %v67_v45 = vsel %vm59_vm3, %v50_v37, %v66_v43  ;;  %v61_v23 = vsel %vm57_vm1, %v41_v13, %v44_v35  ;;  %v63_v24 = vsel %vm59_vm3, %v47_v36, %v62_v6 }
  0x8f   :  { %v71_v46 = vsel %vm59_vm3, %v53_v38, %v70_v44  ;;  %v68_v47 = vsel %vm58_vm4, %v65_v41, %v67_v45  ;;  %v64_v16 = vsel %vm58_vm4, %v61_v23, %v63_v24  ;;  %vm180_vm1 = vcmask 261120  }
  0x90   :  { %v72_v48 = vsel %vm58_vm4, %v69_v42, %v71_v46  ;;  %v98_v52 = vand.u32 65535, %v68_v47  ;;  %v99_v53 = vshrl.u32 %v68_v47, 16  ;;  %v118_v31 = vmul.u32 %v288_v40, %v64_v16 }
  0x91   :  { %v76_v50 = vand.u32 65535, %v72_v48  ;;  %v77_v51 = vshrl.u32 %v72_v48, 16  ;;  %vm168_vm2 = vweird.f32 %v271_v7 }
  0x92   :  { %v101_v56 = vmul.u32 %v99_v53, %v74_v49  ;;  %v102_v58 = vmul.u32 %v98_v52, %v75_v54  ;;  %v100_v61 = vmul.u32 %v98_v52, %v74_v49  ;;  %v103_v0 = vmul.u32 %v99_v53, %v75_v54 }
  0x93   :  { %v79_v55 = vmul.u32 %v77_v51, %v74_v49  ;;  %v80_v57 = vmul.u32 %v76_v50, %v75_v54  ;;  %v78_v59 = vmul.u32 %v76_v50, %v74_v49  ;;  %v81_v63 = vmul.u32 %v77_v51, %v75_v54 }
  0x94   :  { %v104_v62 = vshll.u32 %v101_v56, 16  ;;  %v106_v3 = vshll.u32 %v102_v58, 16  ;;  %v105_v21 = vshrl.u32 %v101_v56, 16  ;;  %v107_v27 = vshrl.u32 %v102_v58, 16 }
  0x95   :  { %v82_v60 = vshll.u32 %v79_v55, 16  ;;  %v84_v2 = vshll.u32 %v80_v57, 16  ;;  %v83_v17 = vshrl.u32 %v79_v55, 16  ;;  %v85_v25 = vshrl.u32 %v80_v57, 16 }
  0x96   :  { %vm108_vm6 = vc.u32 %v100_v61, %v104_v62  ;;  %v110_v5 = vadd.s32 %v104_v62, %v100_v61 }
  0x97   :  { %vm86_vm5 = vc.u32 %v78_v59, %v82_v60  ;;  %v88_v4 = vadd.s32 %v82_v60, %v78_v59  ;;  %v109_v9 = vsel %vm108_vm6, 1, %v238_v1 }
  0x98   :  { %v87_v8 = vsel %vm86_vm5, 1, %v238_v1  ;;  %v111_v12 = vadd.s32 %v109_v9, %v103_v0  ;;  %vm112_vm8 = vc.u32 %v110_v5, %v106_v3  ;;  %v114_v29 = vadd.s32 %v110_v5, %v106_v3 }
  0x99   :  { %v89_v10 = vadd.s32 %v87_v8, %v81_v63  ;;  %vm90_vm7 = vc.u32 %v88_v4, %v84_v2  ;;  %v113_v15 = vsel %vm112_vm8, 1, %v238_v1 }
  0x9a   :  { %v91_v14 = vsel %vm90_vm7, 1, %v238_v1  ;;  %v115_v22 = vadd.s32 %v113_v15, %v111_v12 }
  0x9b   :  { %v93_v20 = vadd.s32 %v91_v14, %v89_v10 }
  0x9c   :  { %v116_v28 = vadd.s32 %v115_v22, %v105_v21 }
  0x9d   :  { %v94_v26 = vadd.s32 %v93_v20, %v83_v17 }
  0x9e   :  { %v117_v1 = vadd.s32 %v116_v28, %v107_v27 }
  0x9f   :  { %v95_v19 = vadd.s32 %v94_v26, %v85_v25 }
  0xa0   :  { %v121_v30 = vadd.s32 1, %v117_v1 }
  0xa1   :  { %vm120_vm9 = vc.u32 %v95_v19, %v114_v29  ;;  %v119_v43 = vadd.s32 %v114_v29, %v95_v19 }
  0xa2   :  { %v122_v32 = vsel %vm120_vm9, %v121_v30, %v117_v1 }
  0xa3   :  { %v123_v33 = vadd.s32 %v122_v32, %v118_v31 }
  0xa5   :  { %v124_v34 = vadd.s32 536870912, %v123_v33 }
  0xa7   :  { %v125_v35 = vshrl.u32 %v124_v34, 30 }
  0xa9   :  { %v126_v37 = vshll.u32 %v125_v35, 30  ;;  %v149_v56 = vsub.s32 4, %v125_v35 }
  0xab   :  { %v127_v36 = vsub.s32 %v123_v33, %v126_v37  ;;  %v150_v61 = vsel %vm27_vm12, %v149_v56, %v125_v35 }
  0xac   :  { %v152_v0 = vsel %vm26_vm13, 0, %v150_v61 }
  0xad   :  { %vm128_vm10 = vcmp.lt.s32.totalorder %v127_v36, 0  ;;  %v129_v38 = vsub.s32 0, %v127_v36  ;;  %v169_v6 = vadd.s32 3, %v152_v0 }
  0xaf   :  { %v130_v39 = vsel %vm128_vm10, %v129_v38, %v127_v36  ;;  %v170_v12 = vand.u32 3, %v169_v6 }
  0xb0   :  { %v131_v41 = vclz %v130_v39 }
  0xb1   :  { %vm172_vm14 = vcmp.eq.s32.totalorder %v170_v12, 0  ;;  %vm175_vm15 = vcmp.eq.s32.totalorder %v170_v12, 2  ;;  %vm171_vm0 = vcmp.lt.s32.totalorder %v170_v12, 2 }
  0xb2   :  { %v199_v42 = vadd.s32 4294967294, %v131_v41 }
  0xb4   :  { %vm200_vm11 = vcmp.lt.s32.totalorder %v199_v42, 0 }
  0xb5   :  { %v134_v18 = vsel %vm200_vm11, 0, %v199_v42 }
  0xb6   :  { %v135_v44 = vsub.s32 32, %v134_v18  ;;  %v139_v45 = vsub.s32 4294967266, %v134_v18  ;;  %v136_v46 = vshll.u32 %v127_v36, %v134_v18 }
  0xb8   :  { %v137_v47 = vshrl.u32 %v119_v43, %v135_v44  ;;  %v140_v48 = vadd.s32 127, %v139_v45 }
  0xba   :  { %v138_v40 = vor.u32 %v137_v47, %v136_v46  ;;  %v141_v49 = vshll.u32 %v140_v48, 23 }
  0xbc   :  { %v142_v50 = vor.u32 4788187, %v141_v49  ;;  %v145_v52 = vcvt.s32.f32 %v138_v40 }
  0xbe   :  { %v143_v51 = vand.u32 2147483647, %v142_v50 }
  0xc0   :  { %v146_v53 = vmul.f32 %v145_v52, %v143_v51 }
  0xc2   :  { %v147_v54 = vxor.u32 2147483648, %v146_v53 }
  0xc4   :  { %v148_v55 = vsel %vm27_vm12, %v147_v54, %v146_v53 }
  0xc5   :  { %v151_v57 = vsel %vm26_vm13, %v271_v7, %v148_v55 }
  0xc6   :  { %v153_v58 = vmul.f32 %v151_v57, %v151_v57 }
  0xc8   :  { %v154_v59 = vmul.f32 -0.001358992, %v153_v58  ;;  %v161_v60 = vmul.f32 -0.00019511016, %v153_v58 }
  0xca   :  { %v155_v62 = vadd.f32 0.041655596, %v154_v59  ;;  %v162_v63 = vadd.f32 0.008332121, %v161_v60 }
  0xcc   :  { %v156_v2 = vmul.f32 %v155_v62, %v153_v58  ;;  %v163_v3 = vmul.f32 %v162_v63, %v153_v58 }
  0xce   :  { %v157_v4 = vadd.f32 -0.4999988, %v156_v2  ;;  %v164_v5 = vadd.f32 -0.16666654, %v163_v3 }
  0xd0   :  { %v158_v8 = vmul.f32 %v157_v4, %v153_v58  ;;  %v165_v9 = vmul.f32 %v164_v5, %v153_v58 }
  0xd2   :  { %v159_v10 = vadd.f32 1.0, %v158_v8  ;;  %v166_v11 = vadd.f32 1.0, %v165_v9 }
  0xd4   :  { %v167_v13 = vmul.f32 %v166_v11, %v151_v57  ;;  %v176_v14 = vxor.u32 2147483648, %v159_v10 }
  0xd6   :  { %v173_v15 = vxor.u32 2147483648, %v167_v13  ;;  %v177_v20 = vsel %vm175_vm15, %v176_v14, %v167_v13 }
  0xd8   :  { %v174_v17 = vsel %vm172_vm14, %v159_v10, %v173_v15 }
  0xd9   :  { %v178_v21 = vsel %vm171_vm0, %v174_v17, %v177_v20 }
  0xda   :  { %v179_v22 = vsel %vm168_vm2, nan, %v178_v21 }
  0xdb   :  { %181 = vst.msk [vmem:[#allocation2] sm:$0xff] %vm180_vm1, %v179_v22 }
  0xdc   :  { %192 = dma.vmem_to_hbm [thread:$0]  %s188_s1, 128, %s190_s17, [#allocation3]  }
  0xdd   :  { %236 = dma.done.wait [#allocation3], 128  }
  0xde   :  { %237 = vsyncadd [#allocation3], 4294967168 }
  0xdf   :  { %197 = vsyncpa [#allocation3], 1 }

</bundles_post_ra>
